<compile_context>
chip_gen: v7x
topology: tpu7x:2x2x1
jax: 0.10.0
libtpu: 0.0.40
codegen_flags: <defaults>
</compile_context>

<pallas_src>
import functools

import jax
import jax.numpy as jnp
from jax.experimental import pallas as pl
from jax.experimental.pallas import tpu as pltpu

LN_EPS = 1e-5    # nn.LayerNorm default eps
L2_EPS = 1e-12   # F.normalize default eps
_SQRT_HALF = 0.7071067811865476


# ------------------------- small helpers -------------------------

def _tpu_vmem_capacity_bytes():
    """Physical VMEM per core; 0 if the query is unavailable (=> conservative tuning)."""
    try:
        return int(pltpu.get_tpu_info().vmem_capacity_bytes)
    except Exception:  # pragma: no cover - conservative fallback
        return 0


def _plan_seq_tiles(seq_len, proj_cap, cov_cap):
    """Plan the token-axis tiling shared by kernels 1 and 2.

    Returns (proj_tile, cov_tile, padded_len).  Every block is either a full-dim block
    or a multiple-of-8 tile, and padded_len is a multiple of proj_tile (and cov_tile),
    so all BlockSpecs are legal for arbitrary sequence lengths.
    """
    if seq_len <= proj_cap:
        tp, lp = seq_len, seq_len                      # single full-dim block
    else:
        tp = 0
        for t in range(min(proj_cap, seq_len), 7, -1):  # aligned divisor if one exists
            if seq_len % t == 0 and t % 8 == 0:
                tp = t
                break
        if tp:
            lp = seq_len
        else:                                           # pad + in-kernel mask path
            tp = max(8, (proj_cap // 8) * 8)
            lp = ((seq_len + tp - 1) // tp) * tp
    if lp <= cov_cap:
        tc = lp
    else:
        tc = tp
        for m in range(lp // tp, 0, -1):                # biggest multiple of tp <= cap
            t = tp * m
            if lp % t == 0 and t <= cov_cap:
                tc = t
                break
    return tp, tc, lp


def _sel_matrix(out_size, in_size, k=3, stride=2):
    """(k*out_size, in_size) stack of 0/1 row-selection matrices for a k-tap stride-s conv."""
    oh = jnp.arange(out_size)
    ii = jnp.arange(in_size)
    mats = [(ii[None, :] == (stride * oh[:, None] + kk)).astype(jnp.float32)
            for kk in range(k)]
    return jnp.concatenate(mats, axis=0)


def _erf_approx(x):
    # Abramowitz & Stegun 7.1.26 rational approximation, |error| <= 1.5e-7.
    p = 0.3275911
    a1, a2, a3, a4, a5 = (0.254829592, -0.284496736, 1.421413741,
                          -1.453152027, 1.061405429)
    ax = jnp.abs(x)
    t = 1.0 / (1.0 + p * ax)
    poly = ((((a5 * t + a4) * t + a3) * t + a2) * t + a1) * t
    y = 1.0 - poly * jnp.exp(-ax * ax)
    return jnp.where(x < 0.0, -y, y)


def _gelu_exact(x):
    # exact (erf) GELU == nn.GELU(); erf computed with VPU/EUP ops only.
    return 0.5 * x * (1.0 + _erf_approx(x * _SQRT_HALF))


# ------------------------- kernel 1: fused projection + bias + per-head LayerNorm -------------------------

def _proj_ln_kernel(x_ref, w_ref, b_ref, g_ref, be_ref, o_ref):
    nh, _, _, dh = o_ref.shape
    # Cast the f32 HBM tile to the compute dtype in-kernel (no separate host cast pass).
    x = x_ref[0].astype(o_ref.dtype)                     # (tL, Din)
    # One lane-dense MXU dot over the full hidden dim (weight is VMEM-resident).
    y = jnp.dot(x, w_ref[...], preferred_element_type=jnp.float32) + b_ref[...]
    g = g_ref[...]                                       # (1, dh)
    be = be_ref[...]
    for h in range(nh):                                  # static lane slices, once per tile
        yh = y[:, h * dh:(h + 1) * dh]                   # (tL, dh) f32
        mu = jnp.mean(yh, axis=-1, keepdims=True)
        var = jnp.mean(jnp.square(yh - mu), axis=-1, keepdims=True)
        o_ref[h, 0] = ((yh - mu) * jax.lax.rsqrt(var + LN_EPS) * g + be
                       ).astype(o_ref.dtype)


def pallas_proj_ln(x, w, b, gamma, beta, num_heads, compute_dtype,
                   tile_l, padded_len, vmem_limit_bytes):
    """x:(B,L,Din) f32 -> LayerNorm'd heads (nh, B, Lp, dh) in compute_dtype."""
    B, L, Din = x.shape
    Hdim = w.shape[1]
    dh = Hdim // num_heads
    if padded_len != L:
        x = jnp.pad(x, ((0, 0), (0, padded_len - L), (0, 0)))
    n_l = padded_len // tile_l

    return pl.pallas_call(
        _proj_ln_kernel,
        out_shape=jax.ShapeDtypeStruct((num_heads, B, padded_len, dh), compute_dtype),
        grid=(B, n_l),
        in_specs=[
            pl.BlockSpec((1, tile_l, Din), lambda bb, l: (bb, l, 0)),
            pl.BlockSpec((Din, Hdim), lambda bb, l: (0, 0)),       # constant -> resident
            pl.BlockSpec((1, Hdim), lambda bb, l: (0, 0)),
            pl.BlockSpec((1, dh), lambda bb, l: (0, 0)),
            pl.BlockSpec((1, dh), lambda bb, l: (0, 0)),
        ],
        out_specs=pl.BlockSpec((num_heads, 1, tile_l, dh),
                               lambda bb, l: (0, bb, l, 0)),
        compiler_params=pltpu.CompilerParams(
            dimension_semantics=("parallel", "parallel"),
            vmem_limit_bytes=vmem_limit_bytes),
    )(x, w.astype(compute_dtype),
      b.reshape(1, Hdim).astype(jnp.float32),
      gamma.reshape(1, dh).astype(jnp.float32),
      beta.reshape(1, dh).astype(jnp.float32))


# ------------------------- kernel 2: streaming 'near' cross-covariance (deduped reads) -------------------------

def _crosscov_kernel(h_ref, o_ref, s_acc, cs_acc, *, seq_len, tile_l, masked):
    nh = h_ref.shape[0]
    npairs = nh - 1
    l = pl.program_id(1)

    @pl.when(l == 0)
    def _():
        s_acc[...] = jnp.zeros_like(s_acc)
        cs_acc[...] = jnp.zeros_like(cs_acc)

    if masked:  # static flag: only emitted when the sequence was padded
        row = l * tile_l + jax.lax.broadcasted_iota(jnp.int32, (tile_l, 1), 0)
        keep = row < seq_len

    heads = []
    for h in range(nh):                                  # each head tile read from HBM once
        xh = h_ref[h, 0]                                 # (tL, dh), already LayerNorm'd
        if masked:
            xh = jnp.where(keep, xh, jnp.zeros_like(xh))
        heads.append(xh)
        cs_acc[h] += jnp.sum(xh.astype(jnp.float32), axis=0, keepdims=True)

    for p in range(npairs):                              # all 'near' pair updates per step
        s_acc[p] += jax.lax.dot_general(                 # X1^T X2, LHS contracted on dim 0
            heads[p], heads[p + 1], (((0,), (0,)), ((), ())),
            preferred_element_type=jnp.float32)

    @pl.when(l == pl.num_programs(1) - 1)
    def _():
        dh = s_acc.shape[-1]
        inv_l = 1.0 / seq_len
        for p in range(npairs):
            cs1 = cs_acc[p]                              # (1, dh)
            cs2 = cs_acc[p + 1]
            # Covariance._remove_mean: per-sample scalar mean over all (L, dh) entries,
            # folded algebraically into the accumulated sums.
            m1 = jnp.sum(cs1) * (inv_l / dh)
            m2 = jnp.sum(cs2) * (inv_l / dh)
            # col1[i, j] == cs1[0, i]  (outer product with ones -> no in-kernel transpose)
            col1 = jax.lax.dot_general(cs1, jnp.ones_like(cs1),
                                       (((0,), (0,)), ((), ())),
                                       preferred_element_type=jnp.float32)
            cov = (s_acc[p] - m1 * cs2 - m2 * col1 + seq_len * m1 * m2) * inv_l
            # F.normalize(dim=2): l2-normalize each column (row-index axis).
            nrm = jnp.sqrt(jnp.sum(cov * cov, axis=0, keepdims=True))
            o_ref[0, p] = cov / jnp.maximum(nrm, L2_EPS)


def pallas_cross_cov(heads, seq_len, tile_l, vmem_limit_bytes):
    """heads: (nh, B, Lp, dh) normalized -> (B, nh-1, dh, dh) f32, 'near' pairs."""
    nh, B, Lp, dh = heads.shape
    npairs = nh - 1
    n_l = Lp // tile_l
    masked = (Lp != seq_len)

    return pl.pallas_call(
        functools.partial(_crosscov_kernel, seq_len=seq_len, tile_l=tile_l,
                          masked=masked),
        out_shape=jax.ShapeDtypeStruct((B, npairs, dh, dh), jnp.float32),
        grid=(B, n_l),
        in_specs=[pl.BlockSpec((nh, 1, tile_l, dh), lambda b, l: (0, b, l, 0))],
        out_specs=pl.BlockSpec((1, npairs, dh, dh), lambda b, l: (b, 0, 0, 0)),
        scratch_shapes=[pltpu.VMEM((npairs, dh, dh), jnp.float32),
                        pltpu.VMEM((nh, 1, dh), jnp.float32)],
        compiler_params=pltpu.CompilerParams(
            dimension_semantics=("parallel", "arbitrary"),
            vmem_limit_bytes=vmem_limit_bytes),
    )(heads)


# ------------------------- kernel 3: fused conv1 + GELU + conv2 + flatten + classifier2 -------------------------

def _tail_kernel(cov_ref, a1_ref, a1t_ref, p_ref, sr_ref, sc_ref, m_ref, bc_ref, o_ref):
    C = p_ref.shape[1]
    OC = p_ref.shape[0]
    ncls = m_ref.shape[0]

    a1 = a1_ref[...]
    a1t = a1t_ref[...]
    sr = sr_ref[...]
    sc = sc_ref[...]

    # R[ci] = A_all @ x[ci] @ A_all^T; block (kh,kw) of R[ci] holds x[ci, 2*oh+kh, 2*ow+kw].
    r_blocks = []
    for ci in range(C):
        t = jnp.dot(a1, cov_ref[0, ci], preferred_element_type=jnp.float32)
        r_blocks.append(jnp.dot(t, a1t, preferred_element_type=jnp.float32))

    # conv1 (3x3, stride 2, no bias): weight pattern (kron-expanded) * R, then 9-block sum
    # via [I I I] matmuls; followed by exact GELU.
    g_chans = []
    for co in range(OC):
        acc = r_blocks[0] * p_ref[co, 0]
        for ci in range(1, C):
            acc = acc + r_blocks[ci] * p_ref[co, ci]
        z = jnp.dot(jnp.dot(sr, acc, preferred_element_type=jnp.float32), sc,
                    preferred_element_type=jnp.float32)          # (OH1, OW1)
        g_chans.append(_gelu_exact(z))

    # conv2 + flatten + classifier2 (all linear) pre-folded into m_ref:
    #   logits[n] = bias[n] + sum_{c,i,j} M[n,c,i,j] * gelu(conv1)[c,i,j]
    logits = bc_ref[...]                                         # (1, ncls)
    lane = jax.lax.broadcasted_iota(jnp.int32, (1, ncls), 1)
    for n in range(ncls):
        s = 0.0
        for co in range(OC):
            s = s + jnp.sum(g_chans[co] * m_ref[n, co])
        logits = logits + s * (lane == n).astype(jnp.float32)
    o_ref[0] = logits


def pallas_tail(cov, w1, w2, wcls, bcls):
    """cov: (B, C, dh, dh) -> logits (B, num_classes) in one fused kernel per sample."""
    B, C, H, _ = cov.shape
    OC = w1.shape[0]
    ncls = wcls.shape[1]
    k, s = 3, 2
    OH1 = (H - k) // s + 1
    OH2 = (OH1 - k) // s + 1

    a1 = _sel_matrix(OH1, H)                                     # (3*OH1, H)
    a1t = a1.T                                                   # (H, 3*OH1)
    eye1 = jnp.eye(OH1, dtype=jnp.float32)
    srow = jnp.concatenate([eye1, eye1, eye1], axis=1)           # (OH1, 3*OH1)
    scol = srow.T                                                # (3*OH1, OH1)
    # conv1 weights kron-expanded so the 9-tap weighted block sum is pure elementwise+matmul.
    pmat = jnp.kron(w1.astype(jnp.float32),
                    jnp.ones((1, 1, OH1, OH1), jnp.float32))     # (OC, C, 3*OH1, 3*OH1)
    # Fold conv2(no bias) + flatten(channel-major) + classifier2 into one linear map M.
    sel2 = _sel_matrix(OH2, OH1).reshape(3, OH2, OH1)            # sel2[k,o,i] = [i == 2o+k]
    wc_r = wcls.reshape(OC, OH2, OH2, ncls).astype(jnp.float32)
    mmap = jnp.einsum('dopn,dckl,koi,lpj->ncij',
                      wc_r, w2.astype(jnp.float32), sel2, sel2)  # (ncls, OC, OH1, OH1)
    bc = bcls.reshape(1, ncls).astype(jnp.float32)

    out = pl.pallas_call(
        _tail_kernel,
        out_shape=jax.ShapeDtypeStruct((B, 1, ncls), jnp.float32),
        grid=(B,),
        in_specs=[
            pl.BlockSpec((1, C, H, H), lambda b: (b, 0, 0, 0)),
            pl.BlockSpec((3 * OH1, H), lambda b: (0, 0)),
            pl.BlockSpec((H, 3 * OH1), lambda b: (0, 0)),
            pl.BlockSpec((OC, C, 3 * OH1, 3 * OH1), lambda b: (0, 0, 0, 0)),
            pl.BlockSpec((OH1, 3 * OH1), lambda b: (0, 0)),
            pl.BlockSpec((3 * OH1, OH1), lambda b: (0, 0)),
            pl.BlockSpec((ncls, OC, OH1, OH1), lambda b: (0, 0, 0, 0)),
            pl.BlockSpec((1, ncls), lambda b: (0, 0)),
        ],
        out_specs=pl.BlockSpec((1, 1, ncls), lambda b: (b, 0, 0)),
        compiler_params=pltpu.CompilerParams(dimension_semantics=("parallel",)),
    )(cov, a1, a1t, pmat, srow, scol, mmap, bc)
    return out.reshape(B, ncls)


# ------------------------- model forward -------------------------

def moment_probing_wsi(x, params, num_heads, compute_dtype=jnp.bfloat16,
                       proj_tl_cap=1024, cov_tl_cap=None, vmem_limit_bytes=None):
    """Forward pass of Moment_Probing_WSI (cross_type='near')."""
    x = x[:, 1:, :]                                              # drop the class token
    B, L, Din = x.shape

    # Per-generation tuning: 64 MiB VMEM parts (v7x) -> conservative caps/limit,
    # 128 MiB parts (v5e/v6e) -> bigger covariance tiles + higher scoped limit.
    if cov_tl_cap is None or vmem_limit_bytes is None:
        big_vmem = _tpu_vmem_capacity_bytes() >= 100 * 1024 * 1024
        if cov_tl_cap is None:
            cov_tl_cap = 8192 if big_vmem else 4096
        if vmem_limit_bytes is None:
            vmem_limit_bytes = (96 if big_vmem else 48) * 1024 * 1024

    tl_proj, tl_cov, l_padded = _plan_seq_tiles(L, proj_tl_cap, cov_tl_cap)

    heads = pallas_proj_ln(x, params["proj_w"], params["proj_b"],
                           params["ln_g"], params["ln_b"],
                           num_heads, compute_dtype, tl_proj, l_padded,
                           vmem_limit_bytes)                     # (nh, B, Lp, dh)
    cov = pallas_cross_cov(heads, L, tl_cov, vmem_limit_bytes)   # (B, nh-1, dh, dh) f32
    return pallas_tail(cov, params["conv1_w"], params["conv2_w"],
                       params["cls2_w"], params["cls2_b"])       # classifier2 logits


# ------------------------- pure-JAX reference -------------------------

def reference_forward(x, params, num_heads):
    hp = jax.lax.Precision.HIGHEST
    x = x[:, 1:, :]
    y = jnp.einsum("bld,dh->blh", x, params["proj_w"], precision=hp) + params["proj_b"]
    B, L, H = y.shape
    dh = H // num_heads
    heads = jnp.transpose(y.reshape(B, L, num_heads, dh), (2, 0, 1, 3))

    def ln(h):
        mu = h.mean(-1, keepdims=True)
        var = jnp.square(h - mu).mean(-1, keepdims=True)
        return (h - mu) / jnp.sqrt(var + LN_EPS) * params["ln_g"] + params["ln_b"]

    covs = []
    for i in range(num_heads - 1):
        a = ln(heads[i]); b = ln(heads[i + 1])
        a = a - a.mean(axis=(1, 2), keepdims=True)
        b = b - b.mean(axis=(1, 2), keepdims=True)
        c = jnp.einsum("bnd,bne->bde", a, b, precision=hp) / L
        n = jnp.sqrt(jnp.sum(c * c, axis=1, keepdims=True))
        covs.append(c / jnp.maximum(n, L2_EPS))
    cov = jnp.stack(covs, axis=1)
    c1 = jax.lax.conv_general_dilated(cov, params["conv1_w"], (2, 2), "VALID",
                                      dimension_numbers=("NCHW", "OIHW", "NCHW"),
                                      precision=hp)
    c1 = jax.nn.gelu(c1, approximate=False)
    c2 = jax.lax.conv_general_dilated(c1, params["conv2_w"], (2, 2), "VALID",
                                      dimension_numbers=("NCHW", "OIHW", "NCHW"),
                                      precision=hp)
    feat = c2.reshape(c2.shape[0], -1)
    return (jnp.einsum("bf,fc->bc", feat, params["cls2_w"], precision=hp)
            + params["cls2_b"])


# ------------------------- main -------------------------

if __name__ == "__main__":
    # Small config consistent with the module: num_heads=4 -> 3 "near" covariance
    # channels, matching Conv2d(3, 3, ...).  classifier2 in_features follows the same
    # conv arithmetic that yields 1587 for the default (384/4 = 96) head dim.
    B, num_tokens, in_dim = 2, 9, 32
    hidden_dim, num_heads, num_classes = 32, 4, 2
    dh = hidden_dim // num_heads
    oh1 = (dh - 3) // 2 + 1
    oh2 = (oh1 - 3) // 2 + 1
    cls_in = 3 * oh2 * oh2

    key = jax.random.PRNGKey(0)
    ks = jax.random.split(key, 10)
    x = jax.random.normal(ks[0], (B, num_tokens, in_dim), jnp.float32)
    params = {
        "proj_w": 0.05 * jax.random.normal(ks[1], (in_dim, hidden_dim), jnp.float32),
        "proj_b": 0.01 * jax.random.normal(ks[2], (hidden_dim,), jnp.float32),
        "ln_g": 1.0 + 0.1 * jax.random.normal(ks[3], (dh,), jnp.float32),
        "ln_b": 0.1 * jax.random.normal(ks[4], (dh,), jnp.float32),
        "conv1_w": 0.2 * jax.random.normal(ks[5], (3, 3, 3, 3), jnp.float32),
        "conv2_w": 0.2 * jax.random.normal(ks[6], (3, 3, 3, 3), jnp.float32),
        "cls2_w": 0.1 * jax.random.normal(ks[7], (cls_in, num_classes), jnp.float32),
        "cls2_b": 0.01 * jax.random.normal(ks[8], (num_classes,), jnp.float32),
    }

    ref = reference_forward(x, params, num_heads)

    # f32 compute path: tight correctness check against the HIGHEST-precision reference.
    out_f32 = jax.block_until_ready(
        moment_probing_wsi(x, params, num_heads, compute_dtype=jnp.float32))
    assert out_f32.shape == (B, num_classes)
    err32 = float(jnp.max(jnp.abs(out_f32 - ref)))
    assert err32 < 5e-3, f"f32 mismatch vs reference: {err32}"

    # bf16 MXU-input path (f32 accumulation / LN stats): wider tolerance accounts for
    # bf16 operand rounding relative to the float32 HIGHEST reference.
    out_bf16 = jax.block_until_ready(
        moment_probing_wsi(x, params, num_heads, compute_dtype=jnp.bfloat16))
    assert out_bf16.shape == (B, num_classes)
    err16 = float(jnp.max(jnp.abs(out_bf16 - ref)))
    assert err16 < 5e-2, f"bf16 mismatch vs reference: {err16}"

    # Pad + mask path: L=12 tokens with tiny tile caps -> Lp=16, two covariance steps,
    # last-tile row masking.  Exercises the arbitrary-sequence-length support.
    x2 = jax.random.normal(ks[9], (B, 13, in_dim), jnp.float32)
    ref2 = reference_forward(x2, params, num_heads)
    out2 = jax.block_until_ready(
        moment_probing_wsi(x2, params, num_heads, compute_dtype=jnp.float32,
                           proj_tl_cap=8, cov_tl_cap=8))
    assert out2.shape == (B, num_classes)
    err2 = float(jnp.max(jnp.abs(out2 - ref2)))
    assert err2 < 5e-3, f"padded-path mismatch vs reference: {err2}"

    print("KERNEL_OK")
</pallas_src>

<mosaic_0001>
module attributes {stable_mosaic.version = 11 : i64} {
  func.func @_proj_ln_kernel(%arg0: i32, %arg1: i32, %arg2: memref<1x8x32xf32, #tpu.memory_space<vmem>>, %arg3: memref<32x32xf32, #tpu.memory_space<vmem>>, %arg4: memref<1x32xf32, #tpu.memory_space<vmem>>, %arg5: memref<1x8xf32, #tpu.memory_space<vmem>>, %arg6: memref<1x8xf32, #tpu.memory_space<vmem>>, %arg7: memref<4x1x8x8xf32, #tpu.memory_space<vmem>>) attributes {dimension_semantics = [#tpu.dimension_semantics<parallel>, #tpu.dimension_semantics<parallel>], iteration_bounds = array<i64: 2, 1>, scalar_prefetch = 0 : i64, scratch_operands = 0 : i64, tpu.core_type = #tpu.core_type<tc>, window_params = [{transform_indices = @transform_0, window_bounds = array<i64: 1, 8, 32>}, {pipeline_mode = #tpu.pipeline_mode<synchronous>, transform_indices = @transform_1, window_bounds = array<i64: 32, 32>}, {pipeline_mode = #tpu.pipeline_mode<synchronous>, transform_indices = @transform_2, window_bounds = array<i64: 1, 32>}, {pipeline_mode = #tpu.pipeline_mode<synchronous>, transform_indices = @transform_3, window_bounds = array<i64: 1, 8>}, {pipeline_mode = #tpu.pipeline_mode<synchronous>, transform_indices = @transform_4, window_bounds = array<i64: 1, 8>}, {transform_indices = @transform_5, window_bounds = array<i64: 4, 1, 8, 8>}]} {
    %c0 = arith.constant 0 : index
    %c0_0 = arith.constant 0 : index
    %c0_1 = arith.constant 0 : index
    %0 = vector.load %arg2[%c0, %c0_0, %c0_1] : memref<1x8x32xf32, #tpu.memory_space<vmem>>, vector<1x8x32xf32>
    %1 = vector.shape_cast %0 : vector<1x8x32xf32> to vector<8x32xf32>
    %c0_2 = arith.constant 0 : index
    %c0_3 = arith.constant 0 : index
    %2 = vector.load %arg3[%c0_2, %c0_3] : memref<32x32xf32, #tpu.memory_space<vmem>>, vector<32x32xf32>
    %cst = arith.constant dense<0.000000e+00> : vector<8x32xf32>
    %3 = tpu.matmul %1, %2, %cst {dimension_numbers = #tpu.dot_dimension_numbers<[1], [0], [0], [1], [0, 0, 1, 1], [], []>} : vector<8x32xf32>, vector<32x32xf32>, vector<8x32xf32> -> vector<8x32xf32>
    %c0_4 = arith.constant 0 : index
    %c0_5 = arith.constant 0 : index
    %4 = vector.load %arg4[%c0_4, %c0_5] : memref<1x32xf32, #tpu.memory_space<vmem>>, vector<1x32xf32>
    %5 = vector.broadcast %4 : vector<1x32xf32> to vector<8x32xf32>
    %6 = arith.addf %3, %5 : vector<8x32xf32>
    %c0_6 = arith.constant 0 : index
    %c0_7 = arith.constant 0 : index
    %7 = vector.load %arg5[%c0_6, %c0_7] : memref<1x8xf32, #tpu.memory_space<vmem>>, vector<1x8xf32>
    %c0_8 = arith.constant 0 : index
    %c0_9 = arith.constant 0 : index
    %8 = vector.load %arg6[%c0_8, %c0_9] : memref<1x8xf32, #tpu.memory_space<vmem>>, vector<1x8xf32>
    %9 = vector.extract_strided_slice %6 {offsets = [0, 0], sizes = [8, 8], strides = [1, 1]} : vector<8x32xf32> to vector<8x8xf32>
    %cst_10 = arith.constant dense<0.000000e+00> : vector<8xf32>
    %10 = vector.multi_reduction <add>, %9, %cst_10 [1] : vector<8x8xf32> to vector<8xf32>
    %11 = vector.shape_cast %10 : vector<8xf32> to vector<8x1xf32>
    %cst_11 = arith.constant 8.000000e+00 : f32
    %12 = vector.broadcast %cst_11 : f32 to vector<8x1xf32>
    %13 = arith.divf %11, %12 : vector<8x1xf32>
    %14 = vector.broadcast %13 : vector<8x1xf32> to vector<8x8xf32>
    %15 = arith.subf %9, %14 : vector<8x8xf32>
    %16 = arith.mulf %15, %15 : vector<8x8xf32>
    %cst_12 = arith.constant dense<0.000000e+00> : vector<8xf32>
    %17 = vector.multi_reduction <add>, %16, %cst_12 [1] : vector<8x8xf32> to vector<8xf32>
    %18 = vector.shape_cast %17 : vector<8xf32> to vector<8x1xf32>
    %cst_13 = arith.constant 8.000000e+00 : f32
    %19 = vector.broadcast %cst_13 : f32 to vector<8x1xf32>
    %20 = arith.divf %18, %19 : vector<8x1xf32>
    %21 = vector.broadcast %13 : vector<8x1xf32> to vector<8x8xf32>
    %22 = arith.subf %9, %21 : vector<8x8xf32>
    %cst_14 = arith.constant 9.99999974E-6 : f32
    %23 = vector.broadcast %cst_14 : f32 to vector<8x1xf32>
    %24 = arith.addf %20, %23 : vector<8x1xf32>
    %25 = math.rsqrt %24 : vector<8x1xf32>
    %26 = vector.broadcast %25 : vector<8x1xf32> to vector<8x8xf32>
    %27 = arith.mulf %22, %26 : vector<8x8xf32>
    %28 = vector.broadcast %7 : vector<1x8xf32> to vector<8x8xf32>
    %29 = arith.mulf %27, %28 : vector<8x8xf32>
    %30 = vector.broadcast %8 : vector<1x8xf32> to vector<8x8xf32>
    %31 = arith.addf %29, %30 : vector<8x8xf32>
    %c0_15 = arith.constant 0 : index
    %c0_16 = arith.constant 0 : index
    %c0_17 = arith.constant 0 : index
    %c0_18 = arith.constant 0 : index
    %32 = vector.load %arg7[%c0_15, %c0_16, %c0_17, %c0_18] : memref<4x1x8x8xf32, #tpu.memory_space<vmem>>, vector<1x1x8x8xf32>
    %33 = vector.shape_cast %32 : vector<1x1x8x8xf32> to vector<8x8xf32>
    %34 = vector.shape_cast %31 : vector<8x8xf32> to vector<1x1x8x8xf32>
    tpu.vector_store %arg7[%c0_15, %c0_16, %c0_17, %c0_18], %34 {strides = array<i32>} : memref<4x1x8x8xf32, #tpu.memory_space<vmem>>, vector<1x1x8x8xf32>,
    %35 = vector.extract_strided_slice %6 {offsets = [0, 8], sizes = [8, 8], strides = [1, 1]} : vector<8x32xf32> to vector<8x8xf32>
    %cst_19 = arith.constant dense<0.000000e+00> : vector<8xf32>
    %36 = vector.multi_reduction <add>, %35, %cst_19 [1] : vector<8x8xf32> to vector<8xf32>
    %37 = vector.shape_cast %36 : vector<8xf32> to vector<8x1xf32>
    %cst_20 = arith.constant 8.000000e+00 : f32
    %38 = vector.broadcast %cst_20 : f32 to vector<8x1xf32>
    %39 = arith.divf %37, %38 : vector<8x1xf32>
    %40 = vector.broadcast %39 : vector<8x1xf32> to vector<8x8xf32>
    %41 = arith.subf %35, %40 : vector<8x8xf32>
    %42 = arith.mulf %41, %41 : vector<8x8xf32>
    %cst_21 = arith.constant dense<0.000000e+00> : vector<8xf32>
    %43 = vector.multi_reduction <add>, %42, %cst_21 [1] : vector<8x8xf32> to vector<8xf32>
    %44 = vector.shape_cast %43 : vector<8xf32> to vector<8x1xf32>
    %cst_22 = arith.constant 8.000000e+00 : f32
    %45 = vector.broadcast %cst_22 : f32 to vector<8x1xf32>
    %46 = arith.divf %44, %45 : vector<8x1xf32>
    %47 = vector.broadcast %39 : vector<8x1xf32> to vector<8x8xf32>
    %48 = arith.subf %35, %47 : vector<8x8xf32>
    %cst_23 = arith.constant 9.99999974E-6 : f32
    %49 = vector.broadcast %cst_23 : f32 to vector<8x1xf32>
    %50 = arith.addf %46, %49 : vector<8x1xf32>
    %51 = math.rsqrt %50 : vector<8x1xf32>
    %52 = vector.broadcast %51 : vector<8x1xf32> to vector<8x8xf32>
    %53 = arith.mulf %48, %52 : vector<8x8xf32>
    %54 = vector.broadcast %7 : vector<1x8xf32> to vector<8x8xf32>
    %55 = arith.mulf %53, %54 : vector<8x8xf32>
    %56 = vector.broadcast %8 : vector<1x8xf32> to vector<8x8xf32>
    %57 = arith.addf %55, %56 : vector<8x8xf32>
    %c1 = arith.constant 1 : index
    %c0_24 = arith.constant 0 : index
    %c0_25 = arith.constant 0 : index
    %c0_26 = arith.constant 0 : index
    %58 = vector.load %arg7[%c1, %c0_24, %c0_25, %c0_26] : memref<4x1x8x8xf32, #tpu.memory_space<vmem>>, vector<1x1x8x8xf32>
    %59 = vector.shape_cast %58 : vector<1x1x8x8xf32> to vector<8x8xf32>
    %60 = vector.shape_cast %57 : vector<8x8xf32> to vector<1x1x8x8xf32>
    tpu.vector_store %arg7[%c1, %c0_24, %c0_25, %c0_26], %60 {strides = array<i32>} : memref<4x1x8x8xf32, #tpu.memory_space<vmem>>, vector<1x1x8x8xf32>,
    %61 = vector.extract_strided_slice %6 {offsets = [0, 16], sizes = [8, 8], strides = [1, 1]} : vector<8x32xf32> to vector<8x8xf32>
    %cst_27 = arith.constant dense<0.000000e+00> : vector<8xf32>
    %62 = vector.multi_reduction <add>, %61, %cst_27 [1] : vector<8x8xf32> to vector<8xf32>
    %63 = vector.shape_cast %62 : vector<8xf32> to vector<8x1xf32>
    %cst_28 = arith.constant 8.000000e+00 : f32
    %64 = vector.broadcast %cst_28 : f32 to vector<8x1xf32>
    %65 = arith.divf %63, %64 : vector<8x1xf32>
    %66 = vector.broadcast %65 : vector<8x1xf32> to vector<8x8xf32>
    %67 = arith.subf %61, %66 : vector<8x8xf32>
    %68 = arith.mulf %67, %67 : vector<8x8xf32>
    %cst_29 = arith.constant dense<0.000000e+00> : vector<8xf32>
    %69 = vector.multi_reduction <add>, %68, %cst_29 [1] : vector<8x8xf32> to vector<8xf32>
    %70 = vector.shape_cast %69 : vector<8xf32> to vector<8x1xf32>
    %cst_30 = arith.constant 8.000000e+00 : f32
    %71 = vector.broadcast %cst_30 : f32 to vector<8x1xf32>
    %72 = arith.divf %70, %71 : vector<8x1xf32>
    %73 = vector.broadcast %65 : vector<8x1xf32> to vector<8x8xf32>
    %74 = arith.subf %61, %73 : vector<8x8xf32>
    %cst_31 = arith.constant 9.99999974E-6 : f32
    %75 = vector.broadcast %cst_31 : f32 to vector<8x1xf32>
    %76 = arith.addf %72, %75 : vector<8x1xf32>
    %77 = math.rsqrt %76 : vector<8x1xf32>
    %78 = vector.broadcast %77 : vector<8x1xf32> to vector<8x8xf32>
    %79 = arith.mulf %74, %78 : vector<8x8xf32>
    %80 = vector.broadcast %7 : vector<1x8xf32> to vector<8x8xf32>
    %81 = arith.mulf %79, %80 : vector<8x8xf32>
    %82 = vector.broadcast %8 : vector<1x8xf32> to vector<8x8xf32>
    %83 = arith.addf %81, %82 : vector<8x8xf32>
    %c2 = arith.constant 2 : index
    %c0_32 = arith.constant 0 : index
    %c0_33 = arith.constant 0 : index
    %c0_34 = arith.constant 0 : index
    %84 = vector.load %arg7[%c2, %c0_32, %c0_33, %c0_34] : memref<4x1x8x8xf32, #tpu.memory_space<vmem>>, vector<1x1x8x8xf32>
    %85 = vector.shape_cast %84 : vector<1x1x8x8xf32> to vector<8x8xf32>
    %86 = vector.shape_cast %83 : vector<8x8xf32> to vector<1x1x8x8xf32>
    tpu.vector_store %arg7[%c2, %c0_32, %c0_33, %c0_34], %86 {strides = array<i32>} : memref<4x1x8x8xf32, #tpu.memory_space<vmem>>, vector<1x1x8x8xf32>,
    %87 = vector.extract_strided_slice %6 {offsets = [0, 24], sizes = [8, 8], strides = [1, 1]} : vector<8x32xf32> to vector<8x8xf32>
    %cst_35 = arith.constant dense<0.000000e+00> : vector<8xf32>
    %88 = vector.multi_reduction <add>, %87, %cst_35 [1] : vector<8x8xf32> to vector<8xf32>
    %89 = vector.shape_cast %88 : vector<8xf32> to vector<8x1xf32>
    %cst_36 = arith.constant 8.000000e+00 : f32
    %90 = vector.broadcast %cst_36 : f32 to vector<8x1xf32>
    %91 = arith.divf %89, %90 : vector<8x1xf32>
    %92 = vector.broadcast %91 : vector<8x1xf32> to vector<8x8xf32>
    %93 = arith.subf %87, %92 : vector<8x8xf32>
    %94 = arith.mulf %93, %93 : vector<8x8xf32>
    %cst_37 = arith.constant dense<0.000000e+00> : vector<8xf32>
    %95 = vector.multi_reduction <add>, %94, %cst_37 [1] : vector<8x8xf32> to vector<8xf32>
    %96 = vector.shape_cast %95 : vector<8xf32> to vector<8x1xf32>
    %cst_38 = arith.constant 8.000000e+00 : f32
    %97 = vector.broadcast %cst_38 : f32 to vector<8x1xf32>
    %98 = arith.divf %96, %97 : vector<8x1xf32>
    %99 = vector.broadcast %91 : vector<8x1xf32> to vector<8x8xf32>
    %100 = arith.subf %87, %99 : vector<8x8xf32>
    %cst_39 = arith.constant 9.99999974E-6 : f32
    %101 = vector.broadcast %cst_39 : f32 to vector<8x1xf32>
    %102 = arith.addf %98, %101 : vector<8x1xf32>
    %103 = math.rsqrt %102 : vector<8x1xf32>
    %104 = vector.broadcast %103 : vector<8x1xf32> to vector<8x8xf32>
    %105 = arith.mulf %100, %104 : vector<8x8xf32>
    %106 = vector.broadcast %7 : vector<1x8xf32> to vector<8x8xf32>
    %107 = arith.mulf %105, %106 : vector<8x8xf32>
    %108 = vector.broadcast %8 : vector<1x8xf32> to vector<8x8xf32>
    %109 = arith.addf %107, %108 : vector<8x8xf32>
    %c3 = arith.constant 3 : index
    %c0_40 = arith.constant 0 : index
    %c0_41 = arith.constant 0 : index
    %c0_42 = arith.constant 0 : index
    %110 = vector.load %arg7[%c3, %c0_40, %c0_41, %c0_42] : memref<4x1x8x8xf32, #tpu.memory_space<vmem>>, vector<1x1x8x8xf32>
    %111 = vector.shape_cast %110 : vector<1x1x8x8xf32> to vector<8x8xf32>
    %112 = vector.shape_cast %109 : vector<8x8xf32> to vector<1x1x8x8xf32>
    tpu.vector_store %arg7[%c3, %c0_40, %c0_41, %c0_42], %112 {strides = array<i32>} : memref<4x1x8x8xf32, #tpu.memory_space<vmem>>, vector<1x1x8x8xf32>,
    return
  }
  func.func @transform_0(%arg0: i32, %arg1: i32) -> (i32, i32, i32) {
    %c0_i32 = arith.constant 0 : i32
    %c0_i32_0 = arith.constant 0 : i32
    return %arg0, %arg1, %c0_i32 : i32, i32, i32
  }
  func.func @transform_1(%arg0: i32, %arg1: i32) -> (i32, i32) {
    %c0_i32 = arith.constant 0 : i32
    %c0_i32_0 = arith.constant 0 : i32
    %c0_i32_1 = arith.constant 0 : i32
    return %c0_i32, %c0_i32_0 : i32, i32
  }
  func.func @transform_2(%arg0: i32, %arg1: i32) -> (i32, i32) {
    %c0_i32 = arith.constant 0 : i32
    %c0_i32_0 = arith.constant 0 : i32
    %c0_i32_1 = arith.constant 0 : i32
    return %c0_i32, %c0_i32_0 : i32, i32
  }
  func.func @transform_3(%arg0: i32, %arg1: i32) -> (i32, i32) {
    %c0_i32 = arith.constant 0 : i32
    %c0_i32_0 = arith.constant 0 : i32
    %c0_i32_1 = arith.constant 0 : i32
    return %c0_i32, %c0_i32_0 : i32, i32
  }
  func.func @transform_4(%arg0: i32, %arg1: i32) -> (i32, i32) {
    %c0_i32 = arith.constant 0 : i32
    %c0_i32_0 = arith.constant 0 : i32
    %c0_i32_1 = arith.constant 0 : i32
    return %c0_i32, %c0_i32_0 : i32, i32
  }
  func.func @transform_5(%arg0: i32, %arg1: i32) -> (i32, i32, i32, i32) {
    %c0_i32 = arith.constant 0 : i32
    %c0_i32_0 = arith.constant 0 : i32
    %c0_i32_1 = arith.constant 0 : i32
    return %c0_i32, %arg0, %arg1, %c0_i32_0 : i32, i32, i32, i32
  }
}

</mosaic_0001>

<bundles_post_ra>
// kernel: tpu_custom_call.1
= control target key start
LH: loop header
LB: loop body
LE: loop exit
PB: predicated region body
PF: predicated region fallthrough
CT: control target
= control target key end

     0   :  { %10 = vsyncpa [#allocation3], 0  ;;  %s1190_s0 = inlined_call_operand.hbm [shape: f32[2,8,32], index: 0, kind: input, shape index: {}]   ;;  %s1191_s1 = inlined_call_operand.hbm [shape: f32[32,32], index: 1, kind: input, shape index: {}]   ;;  %s1192_s2 = inlined_call_operand.vmem [shape: f32[1,32], index: 2, kind: input, shape index: {}]   ;;  %s1193_s3 = inlined_call_operand.vmem [shape: f32[1,8], index: 3, kind: input, shape index: {}]   ;;  %s1194_s4 = inlined_call_operand.vmem [shape: f32[1,8], index: 4, kind: input, shape index: {}]   ;;  %s1195_s5 = inlined_call_operand.hbm [shape: f32[4,2,8,8], index: 5, kind: output, shape index: {}]  }
   0x1   :  { %12 = vsyncpa [#allocation3 + $0x1], 0 }
   0x2   :  { %13 = vsyncpa [#allocation6], 0 }
   0x3   :  { %14 = vsyncpa [#allocation4], 0 }
   0x4   :  { %16 = vsyncpa [#allocation4 + $0x1], 0  ;;  %s930_s18 = smov 0   ;;  %s932_s19 = smov 0  }
   0x5   :  { %s934_s20 = smov 0   ;;  %s936_s21 = smov 0  }
   0x6   :  { %s938_s22 = smov 0   ;;  %s940_s23 = smov 0  }
   0x7 LB: > { %s600_s24 = sadd.s32 4294967295, %s882_s23   ;;  %s601_s25 = sadd.s32 4294967294, %s882_s23   ;;  %s882_s23 = sphi %s940_s23, %s22_s23   ;;  %s878_s22 = sphi %s938_s22, %s1219_s22   ;;  %s874_s21 = sphi %s936_s21, %s1218_s21   ;;  %s870_s20 = sphi %s934_s20, %s1217_s20   ;;  %s866_s19 = sphi %s932_s19, %s1216_s19   ;;  %s862_s18 = sphi %s930_s18, %s1215_s18  }
   0x8   : > { %p56_p0 = scmp.ne.s32.totalorder %s866_s19, %s862_s18  ;;  %p964_p1 = scmp.eq.s32.totalorder %s600_s24, 0 }
   0x9   : > { %p968_p2 = scmp.eq.s32.totalorder %s600_s24, 1  ;;  %p172_p3 = scmp.eq.s32.totalorder %s601_s25, 1 }
   0xa   : > { %s1200_s26 = scalar_select %p964_p1, 1, 0 }
   0xb   : > { %s1201_s27 = scalar_select %p968_p2, 1, 0 }
   0xc   : > { %p974_p4 = por %p964_p1, %p56_p0  ;;  %p602_p5 = scmp.ge.s32.totalorder %s882_s23, 1 }
   0xd   : > { %p979_p6 = por %p172_p3, %p56_p0  ;;  %p179_p7 = scmp.lt.s32.totalorder %s882_s23, 3 }
   0xe   : > { %s1202_s28 = scalar_select %p974_p4, 1, 0 }
   0xf   : > { %s1203_s29 = scalar_select %p979_p6, 1, 0 }
  0x10   : > { %p984_p8 = pnand %p602_p5, %p179_p7  ;;  %s884_s6 = smov [#allocation5]  }
  0x11   : > { %s191_s7 = sshll.u32 %s884_s6, 4  ;;  %s34_s9 = sadd.s32 1, %s878_s22  ;;  %s192_s7 = int_to_ptr.vmem [resolvable:$true] %s191_s7 }
  0x12   : > { %s1204_s30 = scalar_select %p984_p8, 1, 0 }
  0x13   : > { %p652_p9 = pneg %p984_p8  ;;  %s738_s12 = scalar_lea.hbm %s1191_s1, 512 }
  0x14   : > { %p739_p12 = scmp.ne.s32.totalorder %s1191_s1, %s738_s12  ;;  %p745_p5 = scmp.lt.u32.totalorder %s738_s12, %s1191_s1 }
  0x15   : > { %p993_p11 = pnand %p652_p9, %p964_p1 }
  0x17   : > { %p740_p13 = pneg %p993_p11 }
  0x19   : > { %p741_p0 = pnand %p740_p13, %p739_p12 }
  0x1b   : > { %p742_p3 = pneg %p741_p0 }
  0x1d   : > { %p747_p7 = pnand %p745_p5, %p742_p3 }
  0x1f   : > { %750 = shalt.err (!%p747_p7)
}
  0x20   : > { %s751_s17 = scalar_lea.vmem %s192_s7, 512  ;;  %p759_p1 = scmp.lt.s32.totalorder %s192_s7, %s192_s7 }
  0x21   : > { %p752_p9 = scmp.ne.s32.totalorder %s192_s7, %s751_s17  ;;  %p760_p4 = scmp.lt.s32.totalorder %s751_s17, %s751_s17 }
  0x23   : > { %p754_p10 = pnand %p752_p9, %p740_p13  ;;  %p761_p8 = por %p760_p4, %p759_p1 }
  0x25   : > { %p755_p6 = pneg %p754_p10 }
  0x27   : > { %p762_p2 = pnand %p761_p8, %p755_p6 }
  0x29   : > { %765 = shalt.err (!%p762_p2)
}
  0x2a   : > { %s885_s24 = smov 128   ;;  %s886_s25 = smov 8  }
  0x2b   : > { %655 = dma.hbm_to_vmem [thread:$0]  (!%p993_p11), %s1191_s1, 512, %s192_s7, [#allocation6], %s885_s24, %s885_s24, %s886_s25  }
  0x2c   : > { %p36_p1 = scmp.ge.s32.totalorder %s34_s9, 2  ;;  %s43_s11 = sadd.s32 1, %s870_s20 }
  0x2d   : > { %p50_p2 = scmp.ne.s32.totalorder %s870_s20, %s866_s19  ;;  %p51_p4 = scmp.eq.s32.totalorder %s882_s23, 0 }
  0x2e   : > { %s1221_s9 = smov (%p36_p1, %s34_s9), 0  ;;  %p1207_p8 = scmp.ne.s32.totalorder %s1201_s27, 0 }
  0x2f   : > { %p1020_p6 = por %p51_p4, %p50_p2  ;;  %s38_s8 = ssub.s32 %s878_s22, %s1221_s9 }
  0x30   : > { %p1026_p10 = por %p1207_p8, %p50_p2  ;;  %p665_p12 = scmp.lt.s32.totalorder %s882_s23, 2 }
  0x31   : > { %p41_p11 = scmp.eq.s32.totalorder %s38_s8, 0  ;;  %s214_s7 = sand.u32 1, %s870_s20  }
  0x32   : > { %s605_s14 = sshll.u32 %s214_s7, 3  ;;  %s606_s16 = sshll.u32 %s878_s22, 7 }
  0x33   : > { %s1035_s15 = scalar_select %p41_p11, %s870_s20, %s43_s11  }
  0x34   : > { %s1041_s25 = scalar_lea.hbm %s1190_s0, %s606_s16  ;;  %s218_s27 = scalar_lea.vmem [#allocation2], %s605_s14 }
  0x35   : > { %s226_s6 = sshll.u32 %s218_s27, 4  ;;  %p1047_p13 = pnand %p665_p12, %p1020_p6  ;;  %s1043_s6 = int_to_ptr.vmem [resolvable:$true] %s226_s6 }
  0x36   : > { %s215_s11 = scalar_lea.sflag [#allocation3], %s214_s7  ;;  %s766_s8 = scalar_lea.hbm %s1041_s25, 128 }
  0x37   : > { %p767_p0 = scmp.ne.s32.totalorder %s1041_s25, %s766_s8  ;;  %p768_p3 = pneg %p1047_p13 }
  0x38   : > { %s771_s17 = scalar_lea.hbm %s1190_s0, 256  ;;  %p772_p9 = scmp.lt.u32.totalorder %s1041_s25, %s1190_s0 }
  0x39   : > { %p769_p5 = pnand %p768_p3, %p767_p0  ;;  %p773_p1 = scmp.lt.u32.totalorder %s771_s17, %s766_s8 }
  0x3a   : > { %p775_p4 = scmp.lt.u32.totalorder %s766_s8, %s1041_s25 }
  0x3b   : > { %p770_p7 = pneg %p769_p5  ;;  %p774_p2 = por %p773_p1, %p772_p9 }
  0x3d   : > { %p776_p6 = por %p775_p4, %p774_p2 }
  0x3f   : > { %p777_p8 = pnand %p776_p6, %p770_p7 }
  0x41   : > { %780 = shalt.err (!%p777_p8)
}
  0x42   : > { %s781_s7 = scalar_lea.vmem %s1043_s6, 128  ;;  %s887_s27 = smov [#allocation2]  }
  0x43   : > { %p782_p12 = scmp.ne.s32.totalorder %s1043_s6, %s781_s7  ;;  %s786_s14 = sshll.u32 %s887_s27, 4  ;;  %s787_s14 = int_to_ptr.vmem [resolvable:$false] %s786_s14 }
  0x44   : > { %s788_s16 = scalar_lea.vmem %s787_s14, 256  ;;  %p789_p5 = scmp.lt.s32.totalorder %s1043_s6, %s787_s14 }
  0x45   : > { %p784_p11 = pnand %p782_p12, %p768_p3  ;;  %p790_p9 = scmp.lt.s32.totalorder %s788_s16, %s781_s7 }
  0x47   : > { %p785_p0 = pneg %p784_p11  ;;  %p791_p1 = por %p790_p9, %p789_p5 }
  0x49   : > { %p792_p2 = pnand %p791_p1, %p785_p0 }
  0x4b   : > { %795 = shalt.err (!%p792_p2)
}
  0x4c   : > { %659 = dma.hbm_to_vmem [thread:$0]  (!%p1047_p13), %s1041_s25, 128, %s1043_s6, %s215_s11  }
  0x4d   : > { %p1210_p7 = scmp.ne.s32.totalorder %s1204_s30, 0 }
  0x4e   : > { %s1079_s8 = sand.u32 (!%p1210_p7), 1, %s866_s19   ;;  %p1211_p3 = scmp.ne.s32.totalorder (!%p1210_p7), %s1202_s28, 0 }
  0x4f   : > { %235 = sbr.rel (%p1210_p7) target bundleno = 1073 (0x431), region = 40  ;;  %s608_s17 = sshll.u32 (!%p1210_p7), %s1079_s8, 3 }
  0x50   : > { %s238_s12 = scalar_lea.sflag (!%p1210_p7), [#allocation3], %s1079_s8  ;;  %s241_s24 = scalar_lea.vmem (!%p1210_p7), [#allocation2], %s608_s17 }
  0x56   : > { %849 = dma.done.wait (%p1211_p3), %s238_s12, 128  }
  0x57   : > { %851 = vsyncadd (%p1211_p3), %s238_s12, 4294967168  ;;  %p1212_p4 = scmp.ne.s32.totalorder %s1200_s26, 0 }
  0x59   : > { %853 = dma.done.wait (%p1212_p4), [#allocation6], 512  }
  0x5a   : > { %855 = vsyncadd (%p1212_p4), [#allocation6], 4294966784  ;;  %v888_v0 = vmov 0.0|0.0   ;;  %vm889_vm0 = vmmov 0   ;;  %v890_v1 = vmov 0.0   ;;  %v273_v2 = vld [vmem:[#allocation5] sm:$0xff] }
  0x5b   : > { %638 = vmatprep.subr.bf16.mxu0 %v888_v0  ;;  %635 = vmatprep.mubr.msk.f32.mxu0 %vm889_vm0, %v890_v1  ;;  %v274_v3 = vld [vmem:[#allocation5 + $0x8] sm:$0xff]  ;;  %v275_v4 = vld [vmem:[#allocation5 + $0x10] sm:$0xff]  ;;  %v276_v6 = vld [vmem:[#allocation5 + $0x18] sm:$0xff]  ;;  %vm284_vm1 = vcmask 261120   ;;  %s891_s30 = smov 104   ;;  %s892_s25 = smov 120  }
  0x5c   : > { %v639_v5 = vpack.c.bf16 %v274_v3, %v273_v2  ;;  %v642_v7 = vpack.c.bf16 %v276_v6, %v275_v4  ;;  %v272_v8 = vld [vmem:[%s241_s24] sm:$0xff]  ;;  %s893_s6 = smov 112   ;;  %vm360_vm2 = vcmask 64512   ;;  %s894_s7 = smov 8  }
  0x5d   : > { %v611_v9 = vld [vmem:[%s1192_s2] ss:$0 sm:$0xff]  ;;  %s895_s27 = smov 24   ;;  %s896_s17 = smov 16  }
  0x5e   : > { %640 = vmatpush3.bf16.msra.mxu0 %v639_v5  ;;  %v613_v32 = vld [vmem:[%s1193_s3] ss:$0 sm:$0xff]  ;;  %s610_s12 = sshll.u32 %s1079_s8, 5  ;;  %s619_s26 = sshll.u32 %s874_s21, 7 }
  0x5f   : > { %641 = vmatprep.subr.bf16.mxu0 %v888_v0  ;;  %v614_v33 = vld [vmem:[%s1194_s4] ss:$0 sm:$0xff]  ;;  %s271_s24 = scalar_lea.vmem [#allocation7], %s610_s12  ;;  %s494_s21 = scalar_lea.sflag [#allocation4], %s1079_s8 }
  0x60   : > { %s507_s28 = sshll.u32 %s271_s24, 4  ;;  %s1132_s28 = int_to_ptr.vmem [resolvable:$true] %s507_s28 }
  0x62   : > { %643 = vmatpush3.bf16.msra.mxu0 %v642_v7 }
  0x65   : > { %636 = vmatmul.mubr.msk.f32.vlgmr.msra.gmra.mrb[0].mxu0 %vm284_vm1, %v272_v8 }
 0x138   : > { %v354_v10 = vpop.f32.mrb[0].mxu0 }
 0x139   : > { %v355_v11 = vadd.f32 %v611_v9, %v354_v10  ;;  %v637_v12 = vpop.f32.mrb[1].mxu0 }
 0x13b   : > { %459 = vrot.lane.b32.xlu1 %v355_v11, %s891_s30  ;;  %391 = vrot.lane.b32.xlu0 %v355_v11, %s892_s25  ;;  %v361_v31 = vsel %vm360_vm2, %v355_v11, 0.0 }
 0x13f   : > { %425 = vrot.lane.b32.xlu0 %v355_v11, %s893_s6 }
 0x1ad   : > { %v392_v13 = vpop.permute.xlu0 %391  ;;  %v460_v17 = vpop.permute.xlu1 %459 }
 0x1ae   : > { %v394_v14 = vsel %vm360_vm2, %v392_v13, 0.0  ;;  %v462_v18 = vsel %vm360_vm2, %v460_v17, 0.0 }
 0x1af   : > { %395 = vadd.xlane.f32.xlu1 %v394_v14 }
 0x1b1   : > { %v426_v15 = vpop.permute.xlu0 %425 }
 0x1b2   : > { %v428_v16 = vsel %vm360_vm2, %v426_v15, 0.0 }
 0x1b3   : > { %429 = vadd.xlane.f32.xlu0 %v428_v16 }
 0x1b7   : > { %463 = vadd.xlane.f32.xlu0 %v462_v18 }
 0x23c   : > { %v396_v19 = vpop.xlane.xlu1 %395 }
 0x23d   : > { %v397_v20 = vmul.f32 0.125, %v396_v19 }
 0x23f   : > { %v1100_v21 = vsub.f32 %v355_v11, %v397_v20 }
 0x240   : > { %v430_v22 = vpop.xlane.xlu0 %429 }
 0x241   : > { %v431_v23 = vmul.f32 0.125, %v430_v22  ;;  %v399_v24 = vmul.f32 %v1100_v21, %v1100_v21 }
 0x243   : > { %v1104_v25 = vsub.f32 %v355_v11, %v431_v23  ;;  %401 = vrot.lane.b32.xlu1 %v399_v24, %s892_s25 }
 0x244   : > { %v464_v26 = vpop.xlane.xlu0 %463 }
 0x245   : > { %v465_v27 = vmul.f32 0.125, %v464_v26  ;;  %v433_v28 = vmul.f32 %v1104_v25, %v1104_v25 }
 0x247   : > { %v466_v29 = vsub.f32 %v355_v11, %v465_v27  ;;  %435 = vrot.lane.b32.xlu0 %v433_v28, %s893_s6 }
 0x249   : > { %v467_v30 = vmul.f32 %v466_v29, %v466_v29 }
 0x24b   : > { %469 = vrot.lane.b32.xlu1 %v467_v30, %s891_s30 }
 0x26f   : > { %362 = vadd.xlane.f32.xlu1 %v361_v31 }
 0x280   : > { %411 = vrot.lane.b32.xlu1 %v613_v32, %s894_s7 }
 0x284   : > { %479 = vrot.lane.b32.xlu1 %v613_v32, %s895_s27 }
 0x288   : > { %415 = vrot.lane.b32.xlu1 %v614_v33, %s894_s7 }
 0x2b5   : > { %v402_v34 = vpop.permute.xlu1 %401 }
 0x2b6   : > { %v404_v42 = vsel %vm360_vm2, %v402_v34, 0.0 }
 0x2b9   : > { %v436_v43 = vpop.permute.xlu0 %435 }
 0x2ba   : > { %v438_v44 = vsel %vm360_vm2, %v436_v43, 0.0 }
 0x2bd   : > { %v470_v35 = vpop.permute.xlu1 %469 }
 0x2be   : > { %v472_v36 = vsel %vm360_vm2, %v470_v35, 0.0 }
 0x2bf   : > { %473 = vadd.xlane.f32.xlu1 %v472_v36 }
 0x2d0   : > { %483 = vrot.lane.b32.xlu1 %v614_v33, %s895_s27 }
 0x2fc   : > { %v363_v37 = vpop.xlane.xlu1 %362 }
 0x2fd   : > { %v365_v38 = vmul.f32 0.125, %v363_v37 }
 0x2ff   : > { %v366_v39 = vsub.f32 %v355_v11, %v365_v38 }
 0x300   : > { %v412_v45 = vpop.permute.xlu1 %411 }
 0x301   : > { %v367_v40 = vmul.f32 %v366_v39, %v366_v39 }
 0x303   : > { %v368_v41 = vsel %vm360_vm2, %v367_v40, 0.0 }
 0x304   : > { %369 = vadd.xlane.f32.xlu0 %v368_v41  ;;  %v480_v46 = vpop.permute.xlu1 %479 }
 0x308   : > { %405 = vadd.xlane.f32.xlu0 %v404_v42  ;;  %v416_v47 = vpop.permute.xlu1 %415 }
 0x30c   : > { %439 = vadd.xlane.f32.xlu0 %v438_v44 }
 0x322   : > { %445 = vrot.lane.b32.xlu0 %v613_v32, %s896_s17 }
 0x326   : > { %449 = vrot.lane.b32.xlu0 %v614_v33, %s896_s17 }
 0x34c   : > { %v474_v48 = vpop.xlane.xlu1 %473 }
 0x34d   : > { %v475_v49 = vmul.f32 0.125, %v474_v48 }
 0x34f   : > { %v476_v52 = vadd.f32 1e-05, %v475_v49 }
 0x350   : > { %v484_v10 = vpop.permute.xlu1 %483 }
 0x391   : > { %v370_v50 = vpop.xlane.xlu0 %369 }
 0x392   : > { %v371_v51 = vmul.f32 0.125, %v370_v50 }
 0x394   : > { %v372_v53 = vadd.f32 1e-05, %v371_v51 }
 0x395   : > { %v406_v54 = vpop.xlane.xlu0 %405 }
 0x396   : > { %730 = vrsqrt.f32 %v372_v53  ;;  %v407_v55 = vmul.f32 0.125, %v406_v54 }
 0x397   : > { %732 = vrsqrt.f32 %v476_v52 }
 0x398   : > { %v408_v56 = vadd.f32 1e-05, %v407_v55 }
 0x399   : > { %v440_v57 = vpop.xlane.xlu0 %439 }
 0x39a   : > { %734 = vrsqrt.f32 %v408_v56  ;;  %v441_v58 = vmul.f32 0.125, %v440_v57 }
 0x39c   : > { %v442_v59 = vadd.f32 1e-05, %v441_v58 }
 0x39d   : > { %v446_v1 = vpop.permute.xlu0 %445 }
 0x39e   : > { %736 = vrsqrt.f32 %v442_v59 }
 0x3a0   : > { %v731_v60 = vpop.eup %730 }
 0x3a1   : > { %v374_v61 = vmul.f32 %v731_v60, %v366_v39  ;;  %v733_v62 = vpop.eup %732  ;;  %v450_v11 = vpop.permute.xlu0 %449 }
 0x3a2   : > { %v478_v2 = vmul.f32 %v733_v62, %v466_v29 }
 0x3a3   : > { %v381_v63 = vmul.f32 %v613_v32, %v374_v61 }
 0x3a4   : > { %v735_v0 = vpop.eup %734  ;;  %v482_v7 = vmul.f32 %v480_v46, %v478_v2 }
 0x3a5   : > { %v388_v3 = vadd.f32 %v614_v33, %v381_v63  ;;  %v410_v4 = vmul.f32 %v735_v0, %v1100_v21 }
 0x3a6   : > { %v486_v13 = vadd.f32 %v484_v10, %v482_v7 }
 0x3a7   : > { %v414_v5 = vmul.f32 %v412_v45, %v410_v4  ;;  %389 = vst.msk [vmem:[%s271_s24] sm:$0xff] %vm360_vm2, %v388_v3 }
 0x3a8   : > { %v737_v6 = vpop.eup %736 }
 0x3a9   : > { %v444_v8 = vmul.f32 %v737_v6, %v1104_v25  ;;  %v418_v9 = vadd.f32 %v416_v47, %v414_v5 }
 0x3ab   : > { %v448_v12 = vmul.f32 %v446_v1, %v444_v8  ;;  %420 = vrot.lane.b32.xlu0 %v418_v9, %s892_s25  ;;  %s1138_s25 = scalar_lea.hbm %s1195_s5, %s619_s26 }
 0x3ad   : > { %v452_v14 = vadd.f32 %v450_v11, %v448_v12 }
 0x3af   : > { %454 = vrot.lane.b32.xlu1 %v452_v14, %s893_s6  ;;  %488 = vrot.lane.b32.xlu0 %v486_v13, %s891_s30  ;;  %s796_s30 = scalar_lea.vmem %s1132_s28, 512  ;;  %s897_s6 = smov [#allocation7]  }
 0x3b0   : > { %p797_p13 = scmp.ne.s32.totalorder %s1132_s28, %s796_s30  ;;  %s800_s27 = sshll.u32 %s897_s6, 4  ;;  %s801_s27 = int_to_ptr.vmem [resolvable:$false] %s800_s27 }
 0x3b1   : > { %s802_s14 = scalar_lea.vmem %s801_s27, 1024  ;;  %p803_p12 = scmp.lt.s32.totalorder %s1132_s28, %s801_s27 }
 0x3b2   : > { %p798_p6 = pnand %p797_p13, %p1026_p10  ;;  %p804_p11 = scmp.lt.s32.totalorder %s802_s14, %s796_s30 }
 0x3b4   : > { %p799_p8 = pneg %p798_p6  ;;  %p805_p0 = por %p804_p11, %p803_p12 }
 0x3b6   : > { %p806_p5 = pnand %p805_p0, %p799_p8 }
 0x41d   : > { %v421_v15 = vpop.permute.xlu0 %420 }
 0x41e   : > { %615 = vst.msk [vmem:[%s271_s24 + $0x8] sm:$0xff] %vm360_vm2, %v421_v15 }
 0x421   : > { %v489_v16 = vpop.permute.xlu0 %488  ;;  %v455_v17 = vpop.permute.xlu1 %454 }
 0x422   : > { %617 = vst.msk [vmem:[%s271_s24 + $0x18] sm:$0xff] %vm360_vm2, %v489_v16  ;;  %616 = vst.msk [vmem:[%s271_s24 + $0x10] sm:$0xff] %vm360_vm2, %v455_v17 }
 0x423   : > { %809 = shalt.err (!%p806_p5)
}
 0x424   : > { %s810_s16 = scalar_lea.hbm %s1138_s25, 512  ;;  %s814_s24 = scalar_lea.hbm %s1195_s5, 1024 }
 0x425   : > { %p811_p9 = scmp.ne.s32.totalorder %s1138_s25, %s810_s16  ;;  %p815_p7 = scmp.lt.u32.totalorder %s1138_s25, %s1195_s5 }
 0x426   : > { %p816_p3 = scmp.lt.u32.totalorder %s814_s24, %s810_s16  ;;  %p818_p13 = scmp.lt.u32.totalorder %s810_s16, %s1138_s25 }
 0x427   : > { %p812_p1 = pnand %p811_p9, %p1026_p10 }
 0x428   : > { %p817_p4 = por %p816_p3, %p815_p7 }
 0x429   : > { %p813_p2 = pneg %p812_p1 }
 0x42a   : > { %p819_p6 = por %p818_p13, %p817_p4 }
 0x42c   : > { %p820_p8 = pnand %p819_p6, %p813_p2 }
 0x42e   : > { %823 = shalt.err (!%p820_p8)
}
 0x42f   : > { %s898_s11 = smov 128   ;;  %s899_s30 = smov 256  }
 0x430   : > { %650 = dma.vmem_to_hbm [thread:$0]  (%p1026_p10), %s1132_s28, 512, %s1138_s25, %s494_s21, %s898_s11, %s899_s30, %s894_s7  }
 0x431 PF: > { %s522_s6 = sand.u32 1, %s862_s18   ;;  %p1213_p12 = scmp.ne.s32.totalorder %s1203_s29, 0 }
 0x432   : > { %p1214_p11 = scmp.ge.s32.totalorder %s882_s23, 2  ;;  %s523_s27 = scalar_lea.sflag [#allocation4], %s522_s6 }
 0x434   : > { %p661_p0 = pnand %p1214_p11, %p1213_p12 }
 0x436   : > { %857 = dma.done.wait (!%p661_p0), %s523_s27, 512  }
 0x437   : > { %859 = vsyncadd (!%p661_p0), %s523_s27, 4294966784  ;;  %s22_s23 = sadd.s32 1, %s882_s23   ;;  %s1215_s18 = smov %s866_s19 }
 0x438   : > { %p19_p5 = scmp.ge.s32.totalorder %s22_s23, 4   ;;  %s1216_s19 = smov %s870_s20 }
 0x439   : > { %s1217_s20 = smov %s1035_s15  ;;  %s1218_s21 = smov %s878_s22 }
 0x43a   : > { %s1219_s22 = smov %s1221_s9  ;;  %21 = sbr.rel (!%p19_p5) target bundleno = 7 (0x7), region = 92 }
 0x441   :  { %528 = vsyncpa [#allocation3], 1 }
 0x442   :  { %530 = vsyncpa [#allocation3 + $0x1], 1 }
 0x443   :  { %531 = vsyncpa [#allocation6], 1 }
 0x444   :  { %532 = vsyncpa [#allocation4], 1 }
 0x445   :  { %534 = vsyncpa [#allocation4 + $0x1], 1 }

</bundles_post_ra>
